<compile_context>
chip_gen: v5e
topology: v5e:2x2
jax: 0.10.0
libtpu: 0.0.40
codegen_flags: <defaults>
</compile_context>

<pallas_src>
import functools

import jax
import jax.numpy as jnp
from jax.experimental import pallas as pl
from jax.experimental.pallas import tpu as pltpu


# ----------------------------------------------------------------------------
# Helpers
# ----------------------------------------------------------------------------
def _round_up(x, m):
    return ((x + m - 1) // m) * m


def _vmem_capacity_bytes():
    """Physical VMEM per TensorCore; conservative 64 MiB (v7x-class) if query fails."""
    try:
        return int(pltpu.get_tpu_info().vmem_capacity_bytes)
    except Exception:
        return 64 << 20


def _choose_tk(d_in, d0_pad, vmem_capacity, w_bytes=2):
    """Budget-aware K tile for the streamed first-layer weight.

    The double-buffered (tk x d0_pad) bf16 w0 tile dominates VMEM, so cap it:
      * v7x-class (64 MiB physical VMEM):  <= ~10 MiB per buffer
      * v5e / v6e (128 MiB physical VMEM): <= ~16 MiB per buffer
    """
    if vmem_capacity <= (96 << 20):
        w0_buf_cap = 10 << 20
    else:
        w0_buf_cap = 16 << 20
    tk_cap = (w0_buf_cap // (d0_pad * w_bytes)) // 128 * 128
    tk_cap = max(128, min(tk_cap, 4096))
    return min(_round_up(d_in, 128), tk_cap)


# ----------------------------------------------------------------------------
# Fused Pallas kernel
# ----------------------------------------------------------------------------
def _encoder_kernel(x_ref, *refs, n_hidden, leaky_slope, eps, b_true, k_tiles):
    """Fused encoder.

    refs layout (remaining inputs, then output, then scratch):
      refs[2*i + 0]        : w_i     [din_pad, dout_pad]  bf16   (i in [0, n_hidden))
      refs[2*i + 1]        : vec_i   [3, dout_pad]        f32    rows = bias|gamma|beta
      refs[2*n_hidden + 0] : w_heads [dh_pad, 2*l_pad]    bf16   (mean | log_var)
      refs[2*n_hidden + 1] : b_heads [1, 2*l_pad]         f32
      refs[2*n_hidden + 2] : out_ref [B_pad, 2*l_pad]     f32
      refs[2*n_hidden + 3] : acc_ref [B_pad, d0_pad]      f32    VMEM scratch
    """
    out_ref = refs[2 * n_hidden + 2]
    acc_ref = refs[2 * n_hidden + 3]
    k = pl.program_id(0)

    @pl.when(k == 0)
    def _init():
        acc_ref[...] = jnp.zeros_like(acc_ref)

    # First-layer matmul (bf16 x bf16 -> f32 accumulate), K-tiled over the grid axis.
    acc_ref[...] += jnp.dot(x_ref[...], refs[0][...],
                            preferred_element_type=jnp.float32)

    @pl.when(k == k_tiles - 1)
    def _finalize():
        inv_b = 1.0 / float(b_true)
        b_pad = acc_ref.shape[0]

        # Batch-padding mask, hoisted: computed once and reused for every BN block.
        if b_pad == b_true:
            row_mask = None
        else:
            rows = jax.lax.broadcasted_iota(jnp.int32, (b_pad, 1), 0)
            row_mask = (rows < b_true).astype(jnp.float32)

        def bn_act(y, gamma, beta):
            if row_mask is None:
                mu = jnp.sum(y, axis=0, keepdims=True) * inv_b
                msq = jnp.sum(y * y, axis=0, keepdims=True) * inv_b
            else:
                ym = y * row_mask                      # padded rows excluded from stats
                mu = jnp.sum(ym, axis=0, keepdims=True) * inv_b
                msq = jnp.sum(ym * y, axis=0, keepdims=True) * inv_b
            # Biased (train-mode) variance; clamp f32 cancellation so rsqrt never NaNs.
            var = jnp.maximum(msq - mu * mu, 0.0)
            inv_std = jax.lax.rsqrt(var + eps)         # EUP
            yn = (y - mu) * inv_std * gamma + beta
            return jnp.where(yn > 0.0, yn, leaky_slope * yn)

        # First hidden block: bias + BN + LeakyReLU on the accumulated matmul.
        vec0 = refs[1]
        h = bn_act(acc_ref[...] + vec0[0:1, :], vec0[1:2, :], vec0[2:3, :])

        # Remaining hidden blocks (small, VMEM-resident bf16 weights, f32 math).
        for i in range(1, n_hidden):
            w = refs[2 * i][...]
            vec = refs[2 * i + 1]
            y = jnp.dot(h.astype(w.dtype), w,
                        preferred_element_type=jnp.float32) + vec[0:1, :]
            h = bn_act(y, vec[1:2, :], vec[2:3, :])

        # Fused mean|log_var head: one matmul, one lane-dense store.
        wh = refs[2 * n_hidden][...]
        bh_ref = refs[2 * n_hidden + 1]
        out_ref[...] = jnp.dot(h.astype(wh.dtype), wh,
                               preferred_element_type=jnp.float32) + bh_ref[...]


# ----------------------------------------------------------------------------
# Parameter construction (deterministic, synthetic; PyTorch-like shapes)
# ----------------------------------------------------------------------------
def init_params(key, input_dim, hidden_dim, latent_dim):
    params = {"hidden": [], "mean": None, "log_var": None}
    dims = [input_dim] + list(hidden_dim)
    for i in range(len(hidden_dim)):
        key, kw, kb = jax.random.split(key, 3)
        fan_in = dims[i]
        scale = 1.0 / jnp.sqrt(jnp.float32(fan_in))
        w = jax.random.uniform(kw, (dims[i], dims[i + 1]), jnp.float32, -scale, scale)
        b = jax.random.uniform(kb, (1, dims[i + 1]), jnp.float32, -scale, scale)
        gamma = jnp.ones((1, dims[i + 1]), jnp.float32)
        beta = jnp.zeros((1, dims[i + 1]), jnp.float32)
        params["hidden"].append((w, b, gamma, beta))

    def head(key, din, dout):
        kw, kb = jax.random.split(key)
        scale = 1.0 / jnp.sqrt(jnp.float32(din))
        w = jax.random.uniform(kw, (din, dout), jnp.float32, -scale, scale)
        b = jax.random.uniform(kb, (1, dout), jnp.float32, -scale, scale)
        return w, b

    key, km, kv = jax.random.split(key, 3)
    params["mean"] = head(km, hidden_dim[-1], latent_dim)
    params["log_var"] = head(kv, hidden_dim[-1], latent_dim)
    return params


def prepare_params(params, *, vmem_capacity=None):
    """One-time padding, bf16 weight casting, head concat, bias/gamma/beta packing."""
    if vmem_capacity is None:
        vmem_capacity = _vmem_capacity_bytes()

    hidden = params["hidden"]
    d_in = hidden[0][0].shape[0]
    d0_pad = _round_up(hidden[0][0].shape[1], 128)

    tk = _choose_tk(d_in, d0_pad, vmem_capacity)
    d_in_pad = _round_up(d_in, tk)      # pad K to a multiple of tk -> never tk=128 fallback

    prepared = {
        "input_dim": d_in, "d_in_pad": d_in_pad, "tk": tk,
        "vmem_capacity": vmem_capacity,
        "hidden": [], "dims_pad": [],
    }

    for i, (w, b, g, beta) in enumerate(hidden):
        din, dout = w.shape
        din_p = d_in_pad if i == 0 else _round_up(din, 128)
        dout_p = _round_up(dout, 128)
        wp = jnp.zeros((din_p, dout_p), jnp.float32).at[:din, :dout].set(w)
        wp = wp.astype(jnp.bfloat16)        # bf16 weight streaming (f32 accumulate)
        vec = (jnp.zeros((3, dout_p), jnp.float32)
               .at[0, :dout].set(b[0])
               .at[1, :dout].set(g[0])
               .at[2, :dout].set(beta[0]))
        prepared["hidden"].append((wp, vec))
        prepared["dims_pad"].append(dout_p)

    mw, mb = params["mean"]
    vw, vb = params["log_var"]
    d_h, latent = mw.shape
    d_h_p = _round_up(d_h, 128)
    l_p = _round_up(latent, 128)
    wh = jnp.zeros((d_h_p, 2 * l_p), jnp.float32)
    wh = wh.at[:d_h, :latent].set(mw).at[:d_h, l_p:l_p + latent].set(vw)
    wh = wh.astype(jnp.bfloat16)
    bh = jnp.zeros((1, 2 * l_p), jnp.float32)
    bh = bh.at[:, :latent].set(mb).at[:, l_p:l_p + latent].set(vb)

    prepared["heads"] = (wh, bh)
    prepared["latent_dim"] = latent
    prepared["l_pad"] = l_p
    return prepared


# ----------------------------------------------------------------------------
# Forward pass (mirrors ProbabilisticEncoder.forward) — a single pallas_call
# ----------------------------------------------------------------------------
def probabilistic_encoder_forward(prepared, x, *, leaky_slope=0.2, eps=1e-5):
    B, d_in = x.shape
    assert d_in == prepared["input_dim"]
    b_pad = _round_up(B, 8)
    d_in_pad = prepared["d_in_pad"]
    tk = prepared["tk"]
    k_tiles = d_in_pad // tk

    n_hidden = len(prepared["hidden"])
    d0_pad = prepared["dims_pad"][0]
    l_pad = prepared["l_pad"]
    latent = prepared["latent_dim"]
    wh, bh = prepared["heads"]

    # Input: bf16, zero-padded (sublanes -> mult of 8, lanes -> mult of tk).
    xp = (jnp.zeros((b_pad, d_in_pad), jnp.bfloat16)
          .at[:B, :d_in].set(x.astype(jnp.bfloat16)))

    flat_inputs = [xp]
    for (wp, vec) in prepared["hidden"]:
        flat_inputs.extend([wp, vec])
    flat_inputs.extend([wh, bh])

    kernel = functools.partial(
        _encoder_kernel, n_hidden=n_hidden, leaky_slope=leaky_slope,
        eps=eps, b_true=B, k_tiles=k_tiles)

    # Explicit scoped-VMEM budget (defaults are 16/32 MiB; physical is 64/128 MiB).
    streamed = 2 * (b_pad * tk * 2) + 2 * (tk * d0_pad * 2)          # x + w0, dbl-buffered bf16
    resident = (b_pad * d0_pad * 4                                   # acc scratch
                + 2 * b_pad * (2 * l_pad) * 4                        # output
                + 2 * sum(int(a.size) * a.dtype.itemsize for a in flat_inputs[2:]))
    vmem_limit = int((streamed + resident) * 1.5) + (4 << 20)
    vmem_limit = max(vmem_limit, 32 << 20)
    vmem_limit = min(vmem_limit, 100 << 20,
                     max(32 << 20, prepared["vmem_capacity"] - (8 << 20)))

    def build_and_run(single_buffer_constants):
        def const_spec(shape):
            if single_buffer_constants:
                # Grid-constant operands: no need to double-buffer them.
                return pl.BlockSpec(shape, lambda k: (0, 0),
                                    pipeline_mode=pl.Buffered(1))
            return pl.BlockSpec(shape, lambda k: (0, 0))

        in_specs = [pl.BlockSpec((b_pad, tk), lambda k: (0, k))]          # x, K-tiled
        for i, (wp, vec) in enumerate(prepared["hidden"]):
            if i == 0:
                in_specs.append(pl.BlockSpec((tk, d0_pad), lambda k: (k, 0)))  # w0, K-tiled
            else:
                in_specs.append(const_spec(wp.shape))
            in_specs.append(const_spec(vec.shape))
        in_specs.append(const_spec(wh.shape))
        in_specs.append(const_spec(bh.shape))

        return pl.pallas_call(
            kernel,
            grid=(k_tiles,),
            in_specs=in_specs,
            out_specs=pl.BlockSpec((b_pad, 2 * l_pad), lambda k: (0, 0)),
            out_shape=jax.ShapeDtypeStruct((b_pad, 2 * l_pad), jnp.float32),
            scratch_shapes=[pltpu.VMEM((b_pad, d0_pad), jnp.float32)],
            compiler_params=pltpu.CompilerParams(
                dimension_semantics=("arbitrary",),
                vmem_limit_bytes=int(vmem_limit),
            ),
        )(*flat_inputs)

    try:
        out = build_and_run(True)
    except Exception:
        # pipeline_mode=Buffered(1) not honored by this jax/backend; default buffering.
        out = build_and_run(False)

    mean = out[:B, :latent]
    log_var = out[:B, l_pad:l_pad + latent]
    return mean, log_var
    # TODO(synk): dropout (p>0) path not implemented — module default dropout=0 is identity.


# ----------------------------------------------------------------------------
if __name__ == "__main__":
    # Small, module-consistent shapes.
    batch = 8
    input_dim = 32
    hidden_dim = [64, 32]
    latent_dim = 16

    key = jax.random.PRNGKey(0)
    key, kx, kp = jax.random.split(key, 3)
    x = jax.random.normal(kx, (batch, input_dim), dtype=jnp.float32)

    params = init_params(kp, input_dim, hidden_dim, latent_dim)
    prepared = prepare_params(params)

    mean, log_var = probabilistic_encoder_forward(prepared, x)
    jax.block_until_ready(mean)
    jax.block_until_ready(log_var)

    assert mean.shape == (batch, latent_dim)
    assert log_var.shape == (batch, latent_dim)
    assert bool(jnp.all(jnp.isfinite(mean))) and bool(jnp.all(jnp.isfinite(log_var)))
    print("KERNEL_OK")
</pallas_src>

<mosaic_0001>
module attributes {stable_mosaic.version = 11 : i64} {
  func.func @_encoder_kernel(%arg0: i32, %arg1: memref<8x128xbf16, #tpu.memory_space<vmem>>, %arg2: memref<128x128xbf16, #tpu.memory_space<vmem>>, %arg3: memref<3x128xf32, #tpu.memory_space<vmem>>, %arg4: memref<128x128xbf16, #tpu.memory_space<vmem>>, %arg5: memref<3x128xf32, #tpu.memory_space<vmem>>, %arg6: memref<128x256xbf16, #tpu.memory_space<vmem>>, %arg7: memref<1x256xf32, #tpu.memory_space<vmem>>, %arg8: memref<8x256xf32, #tpu.memory_space<vmem>>, %arg9: memref<8x128xf32, #tpu.memory_space<vmem>>) attributes {dimension_semantics = [#tpu.dimension_semantics<arbitrary>], iteration_bounds = array<i64: 1>, scalar_prefetch = 0 : i64, scratch_operands = 1 : i64, tpu.core_type = #tpu.core_type<tc>, window_params = [{transform_indices = @transform_0, window_bounds = array<i64: 8, 128>}, {transform_indices = @transform_1, window_bounds = array<i64: 128, 128>}, {pipeline_mode = #tpu.pipeline_mode<synchronous>, transform_indices = @transform_2, window_bounds = array<i64: 3, 128>}, {pipeline_mode = #tpu.pipeline_mode<synchronous>, transform_indices = @transform_3, window_bounds = array<i64: 128, 128>}, {pipeline_mode = #tpu.pipeline_mode<synchronous>, transform_indices = @transform_4, window_bounds = array<i64: 3, 128>}, {pipeline_mode = #tpu.pipeline_mode<synchronous>, transform_indices = @transform_5, window_bounds = array<i64: 128, 256>}, {pipeline_mode = #tpu.pipeline_mode<synchronous>, transform_indices = @transform_6, window_bounds = array<i64: 1, 256>}, {pipeline_mode = #tpu.pipeline_mode<synchronous>, transform_indices = @transform_7, window_bounds = array<i64: 8, 256>}]} {
    %c0_i32 = arith.constant 0 : i32
    %0 = arith.cmpi eq, %arg0, %c0_i32 : i32
    %1 = arith.extui %0 : i1 to i32
    %c0_i32_0 = arith.constant 0 : i32
    %2 = arith.cmpi ne, %1, %c0_i32_0 : i32
    scf.if %2 {
      %cst_10 = arith.constant 0.000000e+00 : f32
      %12 = vector.broadcast %cst_10 : f32 to vector<8x128xf32>
      %c0_11 = arith.constant 0 : index
      %c0_12 = arith.constant 0 : index
      %13 = vector.load %arg9[%c0_11, %c0_12] : memref<8x128xf32, #tpu.memory_space<vmem>>, vector<8x128xf32>
      tpu.vector_store %arg9[%c0_11, %c0_12], %12 {strides = array<i32>} : memref<8x128xf32, #tpu.memory_space<vmem>>, vector<8x128xf32>,
    } else {
    }
    %c0 = arith.constant 0 : index
    %c0_1 = arith.constant 0 : index
    %3 = vector.load %arg9[%c0, %c0_1] : memref<8x128xf32, #tpu.memory_space<vmem>>, vector<8x128xf32>
    %c0_2 = arith.constant 0 : index
    %c0_3 = arith.constant 0 : index
    %4 = vector.load %arg1[%c0_2, %c0_3] : memref<8x128xbf16, #tpu.memory_space<vmem>>, vector<8x128xbf16>
    %c0_4 = arith.constant 0 : index
    %c0_5 = arith.constant 0 : index
    %5 = vector.load %arg2[%c0_4, %c0_5] : memref<128x128xbf16, #tpu.memory_space<vmem>>, vector<128x128xbf16>
    %cst = arith.constant dense<0.000000e+00> : vector<8x128xf32>
    %6 = tpu.matmul %4, %5, %cst {dimension_numbers = #tpu.dot_dimension_numbers<[1], [0], [0], [1], [0, 0, 1, 1], [], []>} : vector<8x128xbf16>, vector<128x128xbf16>, vector<8x128xf32> -> vector<8x128xf32>
    %7 = arith.addf %3, %6 : vector<8x128xf32>
    %c0_6 = arith.constant 0 : index
    %c0_7 = arith.constant 0 : index
    %8 = vector.load %arg9[%c0_6, %c0_7] : memref<8x128xf32, #tpu.memory_space<vmem>>, vector<8x128xf32>
    tpu.vector_store %arg9[%c0_6, %c0_7], %7 {strides = array<i32>} : memref<8x128xf32, #tpu.memory_space<vmem>>, vector<8x128xf32>,
    %c0_i32_8 = arith.constant 0 : i32
    %9 = arith.cmpi eq, %arg0, %c0_i32_8 : i32
    %10 = arith.extui %9 : i1 to i32
    %c0_i32_9 = arith.constant 0 : i32
    %11 = arith.cmpi ne, %10, %c0_i32_9 : i32
    scf.if %11 {
      %c0_10 = arith.constant 0 : index
      %c0_11 = arith.constant 0 : index
      %12 = vector.load %arg9[%c0_10, %c0_11] : memref<8x128xf32, #tpu.memory_space<vmem>>, vector<8x128xf32>
      %c0_12 = arith.constant 0 : index
      %c0_13 = arith.constant 0 : index
      %13 = vector.load %arg3[%c0_12, %c0_13] : memref<3x128xf32, #tpu.memory_space<vmem>>, vector<1x128xf32>
      %14 = vector.broadcast %13 : vector<1x128xf32> to vector<8x128xf32>
      %15 = arith.addf %12, %14 : vector<8x128xf32>
      %c1 = arith.constant 1 : index
      %c0_14 = arith.constant 0 : index
      %16 = vector.load %arg3[%c1, %c0_14] : memref<3x128xf32, #tpu.memory_space<vmem>>, vector<1x128xf32>
      %c2 = arith.constant 2 : index
      %c0_15 = arith.constant 0 : index
      %17 = vector.load %arg3[%c2, %c0_15] : memref<3x128xf32, #tpu.memory_space<vmem>>, vector<1x128xf32>
      %cst_16 = arith.constant dense<0.000000e+00> : vector<128xf32>
      %18 = vector.multi_reduction <add>, %15, %cst_16 [0] : vector<8x128xf32> to vector<128xf32>
      %19 = vector.shape_cast %18 : vector<128xf32> to vector<1x128xf32>
      %cst_17 = arith.constant 1.250000e-01 : f32
      %20 = vector.broadcast %cst_17 : f32 to vector<1x128xf32>
      %21 = arith.mulf %19, %20 : vector<1x128xf32>
      %22 = arith.mulf %15, %15 : vector<8x128xf32>
      %cst_18 = arith.constant dense<0.000000e+00> : vector<128xf32>
      %23 = vector.multi_reduction <add>, %22, %cst_18 [0] : vector<8x128xf32> to vector<128xf32>
      %24 = vector.shape_cast %23 : vector<128xf32> to vector<1x128xf32>
      %cst_19 = arith.constant 1.250000e-01 : f32
      %25 = vector.broadcast %cst_19 : f32 to vector<1x128xf32>
      %26 = arith.mulf %24, %25 : vector<1x128xf32>
      %27 = arith.mulf %21, %21 : vector<1x128xf32>
      %28 = arith.subf %26, %27 : vector<1x128xf32>
      %cst_20 = arith.constant 0.000000e+00 : f32
      %29 = vector.broadcast %cst_20 : f32 to vector<1x128xf32>
      %30 = arith.maximumf %28, %29 : vector<1x128xf32>
      %cst_21 = arith.constant 9.99999974E-6 : f32
      %31 = vector.broadcast %cst_21 : f32 to vector<1x128xf32>
      %32 = arith.addf %30, %31 : vector<1x128xf32>
      %33 = math.rsqrt %32 : vector<1x128xf32>
      %34 = vector.broadcast %21 : vector<1x128xf32> to vector<8x128xf32>
      %35 = arith.subf %15, %34 : vector<8x128xf32>
      %36 = vector.broadcast %33 : vector<1x128xf32> to vector<8x128xf32>
      %37 = arith.mulf %35, %36 : vector<8x128xf32>
      %38 = vector.broadcast %16 : vector<1x128xf32> to vector<8x128xf32>
      %39 = arith.mulf %37, %38 : vector<8x128xf32>
      %40 = vector.broadcast %17 : vector<1x128xf32> to vector<8x128xf32>
      %41 = arith.addf %39, %40 : vector<8x128xf32>
      %cst_22 = arith.constant 0.000000e+00 : f32
      %42 = vector.broadcast %cst_22 : f32 to vector<8x128xf32>
      %43 = arith.cmpf ogt, %41, %42 : vector<8x128xf32>
      %cst_23 = arith.constant 2.000000e-01 : f32
      %44 = vector.broadcast %cst_23 : f32 to vector<8x128xf32>
      %45 = arith.mulf %44, %41 : vector<8x128xf32>
      %46 = arith.select %43, %41, %45 : vector<8x128xi1>, vector<8x128xf32>
      %c0_24 = arith.constant 0 : index
      %c0_25 = arith.constant 0 : index
      %47 = vector.load %arg4[%c0_24, %c0_25] : memref<128x128xbf16, #tpu.memory_space<vmem>>, vector<128x128xbf16>
      %48 = arith.truncf %46 : vector<8x128xf32> to vector<8x128xbf16>
      %cst_26 = arith.constant dense<0.000000e+00> : vector<8x128xf32>
      %49 = tpu.matmul %48, %47, %cst_26 {dimension_numbers = #tpu.dot_dimension_numbers<[1], [0], [0], [1], [0, 0, 1, 1], [], []>} : vector<8x128xbf16>, vector<128x128xbf16>, vector<8x128xf32> -> vector<8x128xf32>
      %c0_27 = arith.constant 0 : index
      %c0_28 = arith.constant 0 : index
      %50 = vector.load %arg5[%c0_27, %c0_28] : memref<3x128xf32, #tpu.memory_space<vmem>>, vector<1x128xf32>
      %51 = vector.broadcast %50 : vector<1x128xf32> to vector<8x128xf32>
      %52 = arith.addf %49, %51 : vector<8x128xf32>
      %c1_29 = arith.constant 1 : index
      %c0_30 = arith.constant 0 : index
      %53 = vector.load %arg5[%c1_29, %c0_30] : memref<3x128xf32, #tpu.memory_space<vmem>>, vector<1x128xf32>
      %c2_31 = arith.constant 2 : index
      %c0_32 = arith.constant 0 : index
      %54 = vector.load %arg5[%c2_31, %c0_32] : memref<3x128xf32, #tpu.memory_space<vmem>>, vector<1x128xf32>
      %cst_33 = arith.constant dense<0.000000e+00> : vector<128xf32>
      %55 = vector.multi_reduction <add>, %52, %cst_33 [0] : vector<8x128xf32> to vector<128xf32>
      %56 = vector.shape_cast %55 : vector<128xf32> to vector<1x128xf32>
      %cst_34 = arith.constant 1.250000e-01 : f32
      %57 = vector.broadcast %cst_34 : f32 to vector<1x128xf32>
      %58 = arith.mulf %56, %57 : vector<1x128xf32>
      %59 = arith.mulf %52, %52 : vector<8x128xf32>
      %cst_35 = arith.constant dense<0.000000e+00> : vector<128xf32>
      %60 = vector.multi_reduction <add>, %59, %cst_35 [0] : vector<8x128xf32> to vector<128xf32>
      %61 = vector.shape_cast %60 : vector<128xf32> to vector<1x128xf32>
      %cst_36 = arith.constant 1.250000e-01 : f32
      %62 = vector.broadcast %cst_36 : f32 to vector<1x128xf32>
      %63 = arith.mulf %61, %62 : vector<1x128xf32>
      %64 = arith.mulf %58, %58 : vector<1x128xf32>
      %65 = arith.subf %63, %64 : vector<1x128xf32>
      %cst_37 = arith.constant 0.000000e+00 : f32
      %66 = vector.broadcast %cst_37 : f32 to vector<1x128xf32>
      %67 = arith.maximumf %65, %66 : vector<1x128xf32>
      %cst_38 = arith.constant 9.99999974E-6 : f32
      %68 = vector.broadcast %cst_38 : f32 to vector<1x128xf32>
      %69 = arith.addf %67, %68 : vector<1x128xf32>
      %70 = math.rsqrt %69 : vector<1x128xf32>
      %71 = vector.broadcast %58 : vector<1x128xf32> to vector<8x128xf32>
      %72 = arith.subf %52, %71 : vector<8x128xf32>
      %73 = vector.broadcast %70 : vector<1x128xf32> to vector<8x128xf32>
      %74 = arith.mulf %72, %73 : vector<8x128xf32>
      %75 = vector.broadcast %53 : vector<1x128xf32> to vector<8x128xf32>
      %76 = arith.mulf %74, %75 : vector<8x128xf32>
      %77 = vector.broadcast %54 : vector<1x128xf32> to vector<8x128xf32>
      %78 = arith.addf %76, %77 : vector<8x128xf32>
      %cst_39 = arith.constant 0.000000e+00 : f32
      %79 = vector.broadcast %cst_39 : f32 to vector<8x128xf32>
      %80 = arith.cmpf ogt, %78, %79 : vector<8x128xf32>
      %cst_40 = arith.constant 2.000000e-01 : f32
      %81 = vector.broadcast %cst_40 : f32 to vector<8x128xf32>
      %82 = arith.mulf %81, %78 : vector<8x128xf32>
      %83 = arith.select %80, %78, %82 : vector<8x128xi1>, vector<8x128xf32>
      %c0_41 = arith.constant 0 : index
      %c0_42 = arith.constant 0 : index
      %84 = vector.load %arg6[%c0_41, %c0_42] : memref<128x256xbf16, #tpu.memory_space<vmem>>, vector<128x256xbf16>
      %85 = arith.truncf %83 : vector<8x128xf32> to vector<8x128xbf16>
      %cst_43 = arith.constant dense<0.000000e+00> : vector<8x256xf32>
      %86 = tpu.matmul %85, %84, %cst_43 {dimension_numbers = #tpu.dot_dimension_numbers<[1], [0], [0], [1], [0, 0, 1, 1], [], []>} : vector<8x128xbf16>, vector<128x256xbf16>, vector<8x256xf32> -> vector<8x256xf32>
      %c0_44 = arith.constant 0 : index
      %c0_45 = arith.constant 0 : index
      %87 = vector.load %arg7[%c0_44, %c0_45] : memref<1x256xf32, #tpu.memory_space<vmem>>, vector<1x256xf32>
      %88 = vector.broadcast %87 : vector<1x256xf32> to vector<8x256xf32>
      %89 = arith.addf %86, %88 : vector<8x256xf32>
      %c0_46 = arith.constant 0 : index
      %c0_47 = arith.constant 0 : index
      %90 = vector.load %arg8[%c0_46, %c0_47] : memref<8x256xf32, #tpu.memory_space<vmem>>, vector<8x256xf32>
      tpu.vector_store %arg8[%c0_46, %c0_47], %89 {strides = array<i32>} : memref<8x256xf32, #tpu.memory_space<vmem>>, vector<8x256xf32>,
    } else {
    }
    return
  }
  func.func @transform_0(%arg0: i32) -> (i32, i32) {
    %c0_i32 = arith.constant 0 : i32
    %c0_i32_0 = arith.constant 0 : i32
    return %c0_i32, %arg0 : i32, i32
  }
  func.func @transform_1(%arg0: i32) -> (i32, i32) {
    %c0_i32 = arith.constant 0 : i32
    %c0_i32_0 = arith.constant 0 : i32
    return %arg0, %c0_i32 : i32, i32
  }
  func.func @transform_2(%arg0: i32) -> (i32, i32) {
    %c0_i32 = arith.constant 0 : i32
    %c0_i32_0 = arith.constant 0 : i32
    %c0_i32_1 = arith.constant 0 : i32
    return %c0_i32, %c0_i32_0 : i32, i32
  }
  func.func @transform_3(%arg0: i32) -> (i32, i32) {
    %c0_i32 = arith.constant 0 : i32
    %c0_i32_0 = arith.constant 0 : i32
    %c0_i32_1 = arith.constant 0 : i32
    return %c0_i32, %c0_i32_0 : i32, i32
  }
  func.func @transform_4(%arg0: i32) -> (i32, i32) {
    %c0_i32 = arith.constant 0 : i32
    %c0_i32_0 = arith.constant 0 : i32
    %c0_i32_1 = arith.constant 0 : i32
    return %c0_i32, %c0_i32_0 : i32, i32
  }
  func.func @transform_5(%arg0: i32) -> (i32, i32) {
    %c0_i32 = arith.constant 0 : i32
    %c0_i32_0 = arith.constant 0 : i32
    %c0_i32_1 = arith.constant 0 : i32
    return %c0_i32, %c0_i32_0 : i32, i32
  }
  func.func @transform_6(%arg0: i32) -> (i32, i32) {
    %c0_i32 = arith.constant 0 : i32
    %c0_i32_0 = arith.constant 0 : i32
    %c0_i32_1 = arith.constant 0 : i32
    return %c0_i32, %c0_i32_0 : i32, i32
  }
  func.func @transform_7(%arg0: i32) -> (i32, i32) {
    %c0_i32 = arith.constant 0 : i32
    %c0_i32_0 = arith.constant 0 : i32
    %c0_i32_1 = arith.constant 0 : i32
    return %c0_i32, %c0_i32_0 : i32, i32
  }
}

module attributes {stable_mosaic.version = 11 : i64} {
  func.func @_encoder_kernel(%arg0: i32, %arg1: memref<8x128xbf16, #tpu.memory_space<vmem>>, %arg2: memref<128x128xbf16, #tpu.memory_space<vmem>>, %arg3: memref<3x128xf32, #tpu.memory_space<vmem>>, %arg4: memref<128x128xbf16, #tpu.memory_space<vmem>>, %arg5: memref<3x128xf32, #tpu.memory_space<vmem>>, %arg6: memref<128x256xbf16, #tpu.memory_space<vmem>>, %arg7: memref<1x256xf32, #tpu.memory_space<vmem>>, %arg8: memref<8x256xf32, #tpu.memory_space<vmem>>, %arg9: memref<8x128xf32, #tpu.memory_space<vmem>>) attributes {dimension_semantics = [#tpu.dimension_semantics<arbitrary>], iteration_bounds = array<i64: 1>, scalar_prefetch = 0 : i64, scratch_operands = 1 : i64, tpu.core_type = #tpu.core_type<tc>, window_params = [{transform_indices = @transform_0, window_bounds = array<i64: 8, 128>}, {transform_indices = @transform_1, window_bounds = array<i64: 128, 128>}, {pipeline_mode = #tpu.pipeline_mode<synchronous>, transform_indices = @transform_2, window_bounds = array<i64: 3, 128>}, {pipeline_mode = #tpu.pipeline_mode<synchronous>, transform_indices = @transform_3, window_bounds = array<i64: 128, 128>}, {pipeline_mode = #tpu.pipeline_mode<synchronous>, transform_indices = @transform_4, window_bounds = array<i64: 3, 128>}, {pipeline_mode = #tpu.pipeline_mode<synchronous>, transform_indices = @transform_5, window_bounds = array<i64: 128, 256>}, {pipeline_mode = #tpu.pipeline_mode<synchronous>, transform_indices = @transform_6, window_bounds = array<i64: 1, 256>}, {pipeline_mode = #tpu.pipeline_mode<synchronous>, transform_indices = @transform_7, window_bounds = array<i64: 8, 256>}]} {
    %c0_i32 = arith.constant 0 : i32
    %0 = arith.cmpi eq, %arg0, %c0_i32 : i32
    %1 = arith.extui %0 : i1 to i32
    %c0_i32_0 = arith.constant 0 : i32
    %2 = arith.cmpi ne, %1, %c0_i32_0 : i32
    scf.if %2 {
      %cst_10 = arith.constant 0.000000e+00 : f32
      %12 = vector.broadcast %cst_10 : f32 to vector<8x128xf32>
      %c0_11 = arith.constant 0 : index
      %c0_12 = arith.constant 0 : index
      %13 = vector.load %arg9[%c0_11, %c0_12] : memref<8x128xf32, #tpu.memory_space<vmem>>, vector<8x128xf32>
      tpu.vector_store %arg9[%c0_11, %c0_12], %12 {strides = array<i32>} : memref<8x128xf32, #tpu.memory_space<vmem>>, vector<8x128xf32>,
    } else {
    }
    %c0 = arith.constant 0 : index
    %c0_1 = arith.constant 0 : index
    %3 = vector.load %arg9[%c0, %c0_1] : memref<8x128xf32, #tpu.memory_space<vmem>>, vector<8x128xf32>
    %c0_2 = arith.constant 0 : index
    %c0_3 = arith.constant 0 : index
    %4 = vector.load %arg1[%c0_2, %c0_3] : memref<8x128xbf16, #tpu.memory_space<vmem>>, vector<8x128xbf16>
    %c0_4 = arith.constant 0 : index
    %c0_5 = arith.constant 0 : index
    %5 = vector.load %arg2[%c0_4, %c0_5] : memref<128x128xbf16, #tpu.memory_space<vmem>>, vector<128x128xbf16>
    %cst = arith.constant dense<0.000000e+00> : vector<8x128xf32>
    %6 = tpu.matmul %4, %5, %cst {dimension_numbers = #tpu.dot_dimension_numbers<[1], [0], [0], [1], [0, 0, 1, 1], [], []>} : vector<8x128xbf16>, vector<128x128xbf16>, vector<8x128xf32> -> vector<8x128xf32>
    %7 = arith.addf %3, %6 : vector<8x128xf32>
    %c0_6 = arith.constant 0 : index
    %c0_7 = arith.constant 0 : index
    %8 = vector.load %arg9[%c0_6, %c0_7] : memref<8x128xf32, #tpu.memory_space<vmem>>, vector<8x128xf32>
    tpu.vector_store %arg9[%c0_6, %c0_7], %7 {strides = array<i32>} : memref<8x128xf32, #tpu.memory_space<vmem>>, vector<8x128xf32>,
    %c0_i32_8 = arith.constant 0 : i32
    %9 = arith.cmpi eq, %arg0, %c0_i32_8 : i32
    %10 = arith.extui %9 : i1 to i32
    %c0_i32_9 = arith.constant 0 : i32
    %11 = arith.cmpi ne, %10, %c0_i32_9 : i32
    scf.if %11 {
      %c0_10 = arith.constant 0 : index
      %c0_11 = arith.constant 0 : index
      %12 = vector.load %arg9[%c0_10, %c0_11] : memref<8x128xf32, #tpu.memory_space<vmem>>, vector<8x128xf32>
      %c0_12 = arith.constant 0 : index
      %c0_13 = arith.constant 0 : index
      %13 = vector.load %arg3[%c0_12, %c0_13] : memref<3x128xf32, #tpu.memory_space<vmem>>, vector<1x128xf32>
      %14 = vector.broadcast %13 : vector<1x128xf32> to vector<8x128xf32>
      %15 = arith.addf %12, %14 : vector<8x128xf32>
      %c1 = arith.constant 1 : index
      %c0_14 = arith.constant 0 : index
      %16 = vector.load %arg3[%c1, %c0_14] : memref<3x128xf32, #tpu.memory_space<vmem>>, vector<1x128xf32>
      %c2 = arith.constant 2 : index
      %c0_15 = arith.constant 0 : index
      %17 = vector.load %arg3[%c2, %c0_15] : memref<3x128xf32, #tpu.memory_space<vmem>>, vector<1x128xf32>
      %cst_16 = arith.constant dense<0.000000e+00> : vector<128xf32>
      %18 = vector.multi_reduction <add>, %15, %cst_16 [0] : vector<8x128xf32> to vector<128xf32>
      %19 = vector.shape_cast %18 : vector<128xf32> to vector<1x128xf32>
      %cst_17 = arith.constant 1.250000e-01 : f32
      %20 = vector.broadcast %cst_17 : f32 to vector<1x128xf32>
      %21 = arith.mulf %19, %20 : vector<1x128xf32>
      %22 = arith.mulf %15, %15 : vector<8x128xf32>
      %cst_18 = arith.constant dense<0.000000e+00> : vector<128xf32>
      %23 = vector.multi_reduction <add>, %22, %cst_18 [0] : vector<8x128xf32> to vector<128xf32>
      %24 = vector.shape_cast %23 : vector<128xf32> to vector<1x128xf32>
      %cst_19 = arith.constant 1.250000e-01 : f32
      %25 = vector.broadcast %cst_19 : f32 to vector<1x128xf32>
      %26 = arith.mulf %24, %25 : vector<1x128xf32>
      %27 = arith.mulf %21, %21 : vector<1x128xf32>
      %28 = arith.subf %26, %27 : vector<1x128xf32>
      %cst_20 = arith.constant 0.000000e+00 : f32
      %29 = vector.broadcast %cst_20 : f32 to vector<1x128xf32>
      %30 = arith.maximumf %28, %29 : vector<1x128xf32>
      %cst_21 = arith.constant 9.99999974E-6 : f32
      %31 = vector.broadcast %cst_21 : f32 to vector<1x128xf32>
      %32 = arith.addf %30, %31 : vector<1x128xf32>
      %33 = math.rsqrt %32 : vector<1x128xf32>
      %34 = vector.broadcast %21 : vector<1x128xf32> to vector<8x128xf32>
      %35 = arith.subf %15, %34 : vector<8x128xf32>
      %36 = vector.broadcast %33 : vector<1x128xf32> to vector<8x128xf32>
      %37 = arith.mulf %35, %36 : vector<8x128xf32>
      %38 = vector.broadcast %16 : vector<1x128xf32> to vector<8x128xf32>
      %39 = arith.mulf %37, %38 : vector<8x128xf32>
      %40 = vector.broadcast %17 : vector<1x128xf32> to vector<8x128xf32>
      %41 = arith.addf %39, %40 : vector<8x128xf32>
      %cst_22 = arith.constant 0.000000e+00 : f32
      %42 = vector.broadcast %cst_22 : f32 to vector<8x128xf32>
      %43 = arith.cmpf ogt, %41, %42 : vector<8x128xf32>
      %cst_23 = arith.constant 2.000000e-01 : f32
      %44 = vector.broadcast %cst_23 : f32 to vector<8x128xf32>
      %45 = arith.mulf %44, %41 : vector<8x128xf32>
      %46 = arith.select %43, %41, %45 : vector<8x128xi1>, vector<8x128xf32>
      %c0_24 = arith.constant 0 : index
      %c0_25 = arith.constant 0 : index
      %47 = vector.load %arg4[%c0_24, %c0_25] : memref<128x128xbf16, #tpu.memory_space<vmem>>, vector<128x128xbf16>
      %48 = arith.truncf %46 : vector<8x128xf32> to vector<8x128xbf16>
      %cst_26 = arith.constant dense<0.000000e+00> : vector<8x128xf32>
      %49 = tpu.matmul %48, %47, %cst_26 {dimension_numbers = #tpu.dot_dimension_numbers<[1], [0], [0], [1], [0, 0, 1, 1], [], []>} : vector<8x128xbf16>, vector<128x128xbf16>, vector<8x128xf32> -> vector<8x128xf32>
      %c0_27 = arith.constant 0 : index
      %c0_28 = arith.constant 0 : index
      %50 = vector.load %arg5[%c0_27, %c0_28] : memref<3x128xf32, #tpu.memory_space<vmem>>, vector<1x128xf32>
      %51 = vector.broadcast %50 : vector<1x128xf32> to vector<8x128xf32>
      %52 = arith.addf %49, %51 : vector<8x128xf32>
      %c1_29 = arith.constant 1 : index
      %c0_30 = arith.constant 0 : index
      %53 = vector.load %arg5[%c1_29, %c0_30] : memref<3x128xf32, #tpu.memory_space<vmem>>, vector<1x128xf32>
      %c2_31 = arith.constant 2 : index
      %c0_32 = arith.constant 0 : index
      %54 = vector.load %arg5[%c2_31, %c0_32] : memref<3x128xf32, #tpu.memory_space<vmem>>, vector<1x128xf32>
      %cst_33 = arith.constant dense<0.000000e+00> : vector<128xf32>
      %55 = vector.multi_reduction <add>, %52, %cst_33 [0] : vector<8x128xf32> to vector<128xf32>
      %56 = vector.shape_cast %55 : vector<128xf32> to vector<1x128xf32>
      %cst_34 = arith.constant 1.250000e-01 : f32
      %57 = vector.broadcast %cst_34 : f32 to vector<1x128xf32>
      %58 = arith.mulf %56, %57 : vector<1x128xf32>
      %59 = arith.mulf %52, %52 : vector<8x128xf32>
      %cst_35 = arith.constant dense<0.000000e+00> : vector<128xf32>
      %60 = vector.multi_reduction <add>, %59, %cst_35 [0] : vector<8x128xf32> to vector<128xf32>
      %61 = vector.shape_cast %60 : vector<128xf32> to vector<1x128xf32>
      %cst_36 = arith.constant 1.250000e-01 : f32
      %62 = vector.broadcast %cst_36 : f32 to vector<1x128xf32>
      %63 = arith.mulf %61, %62 : vector<1x128xf32>
      %64 = arith.mulf %58, %58 : vector<1x128xf32>
      %65 = arith.subf %63, %64 : vector<1x128xf32>
      %cst_37 = arith.constant 0.000000e+00 : f32
      %66 = vector.broadcast %cst_37 : f32 to vector<1x128xf32>
      %67 = arith.maximumf %65, %66 : vector<1x128xf32>
      %cst_38 = arith.constant 9.99999974E-6 : f32
      %68 = vector.broadcast %cst_38 : f32 to vector<1x128xf32>
      %69 = arith.addf %67, %68 : vector<1x128xf32>
      %70 = math.rsqrt %69 : vector<1x128xf32>
      %71 = vector.broadcast %58 : vector<1x128xf32> to vector<8x128xf32>
      %72 = arith.subf %52, %71 : vector<8x128xf32>
      %73 = vector.broadcast %70 : vector<1x128xf32> to vector<8x128xf32>
      %74 = arith.mulf %72, %73 : vector<8x128xf32>
      %75 = vector.broadcast %53 : vector<1x128xf32> to vector<8x128xf32>
      %76 = arith.mulf %74, %75 : vector<8x128xf32>
      %77 = vector.broadcast %54 : vector<1x128xf32> to vector<8x128xf32>
      %78 = arith.addf %76, %77 : vector<8x128xf32>
      %cst_39 = arith.constant 0.000000e+00 : f32
      %79 = vector.broadcast %cst_39 : f32 to vector<8x128xf32>
      %80 = arith.cmpf ogt, %78, %79 : vector<8x128xf32>
      %cst_40 = arith.constant 2.000000e-01 : f32
      %81 = vector.broadcast %cst_40 : f32 to vector<8x128xf32>
      %82 = arith.mulf %81, %78 : vector<8x128xf32>
      %83 = arith.select %80, %78, %82 : vector<8x128xi1>, vector<8x128xf32>
      %c0_41 = arith.constant 0 : index
      %c0_42 = arith.constant 0 : index
      %84 = vector.load %arg6[%c0_41, %c0_42] : memref<128x256xbf16, #tpu.memory_space<vmem>>, vector<128x256xbf16>
      %85 = arith.truncf %83 : vector<8x128xf32> to vector<8x128xbf16>
      %cst_43 = arith.constant dense<0.000000e+00> : vector<8x256xf32>
      %86 = tpu.matmul %85, %84, %cst_43 {dimension_numbers = #tpu.dot_dimension_numbers<[1], [0], [0], [1], [0, 0, 1, 1], [], []>} : vector<8x128xbf16>, vector<128x256xbf16>, vector<8x256xf32> -> vector<8x256xf32>
      %c0_44 = arith.constant 0 : index
      %c0_45 = arith.constant 0 : index
      %87 = vector.load %arg7[%c0_44, %c0_45] : memref<1x256xf32, #tpu.memory_space<vmem>>, vector<1x256xf32>
      %88 = vector.broadcast %87 : vector<1x256xf32> to vector<8x256xf32>
      %89 = arith.addf %86, %88 : vector<8x256xf32>
      %c0_46 = arith.constant 0 : index
      %c0_47 = arith.constant 0 : index
      %90 = vector.load %arg8[%c0_46, %c0_47] : memref<8x256xf32, #tpu.memory_space<vmem>>, vector<8x256xf32>
      tpu.vector_store %arg8[%c0_46, %c0_47], %89 {strides = array<i32>} : memref<8x256xf32, #tpu.memory_space<vmem>>, vector<8x256xf32>,
    } else {
    }
    return
  }
  func.func @transform_0(%arg0: i32) -> (i32, i32) {
    %c0_i32 = arith.constant 0 : i32
    %c0_i32_0 = arith.constant 0 : i32
    return %c0_i32, %arg0 : i32, i32
  }
  func.func @transform_1(%arg0: i32) -> (i32, i32) {
    %c0_i32 = arith.constant 0 : i32
    %c0_i32_0 = arith.constant 0 : i32
    return %arg0, %c0_i32 : i32, i32
  }
  func.func @transform_2(%arg0: i32) -> (i32, i32) {
    %c0_i32 = arith.constant 0 : i32
    %c0_i32_0 = arith.constant 0 : i32
    %c0_i32_1 = arith.constant 0 : i32
    return %c0_i32, %c0_i32_0 : i32, i32
  }
  func.func @transform_3(%arg0: i32) -> (i32, i32) {
    %c0_i32 = arith.constant 0 : i32
    %c0_i32_0 = arith.constant 0 : i32
    %c0_i32_1 = arith.constant 0 : i32
    return %c0_i32, %c0_i32_0 : i32, i32
  }
  func.func @transform_4(%arg0: i32) -> (i32, i32) {
    %c0_i32 = arith.constant 0 : i32
    %c0_i32_0 = arith.constant 0 : i32
    %c0_i32_1 = arith.constant 0 : i32
    return %c0_i32, %c0_i32_0 : i32, i32
  }
  func.func @transform_5(%arg0: i32) -> (i32, i32) {
    %c0_i32 = arith.constant 0 : i32
    %c0_i32_0 = arith.constant 0 : i32
    %c0_i32_1 = arith.constant 0 : i32
    return %c0_i32, %c0_i32_0 : i32, i32
  }
  func.func @transform_6(%arg0: i32) -> (i32, i32) {
    %c0_i32 = arith.constant 0 : i32
    %c0_i32_0 = arith.constant 0 : i32
    %c0_i32_1 = arith.constant 0 : i32
    return %c0_i32, %c0_i32_0 : i32, i32
  }
  func.func @transform_7(%arg0: i32) -> (i32, i32) {
    %c0_i32 = arith.constant 0 : i32
    %c0_i32_0 = arith.constant 0 : i32
    %c0_i32_1 = arith.constant 0 : i32
    return %c0_i32, %c0_i32_0 : i32, i32
  }
}

</mosaic_0001>

<bundles_post_ra>
// kernel: tpu_custom_call.1
= control target key start
LH: loop header
LB: loop body
LE: loop exit
PB: predicated region body
PF: predicated region fallthrough
CT: control target
= control target key end

     0   :  { %12 = vsyncpa [#allocation4], 0  ;;  %s960_s0 = inlined_call_operand.hbm [shape: bf16[8,128], index: 0, kind: input, shape index: {}]   ;;  %s961_s1 = inlined_call_operand.hbm [shape: bf16[128,128], index: 1, kind: input, shape index: {}]   ;;  %s962_s2 = inlined_call_operand.hbm [shape: f32[3,128], index: 2, kind: input, shape index: {}]   ;;  %s963_s3 = inlined_call_operand.hbm [shape: bf16[128,128], index: 3, kind: input, shape index: {}]   ;;  %s964_s4 = inlined_call_operand.hbm [shape: f32[3,128], index: 4, kind: input, shape index: {}]   ;;  %s965_s5 = inlined_call_operand.hbm [shape: bf16[128,256], index: 5, kind: input, shape index: {}]   ;;  %s966_s6 = inlined_call_operand.vmem [shape: f32[1,256], index: 6, kind: input, shape index: {}]   ;;  %s967_s7 = inlined_call_operand.hbm [shape: f32[8,256], index: 7, kind: output, shape index: {}]  }
   0x1   :  { %13 = vsyncpa [#allocation7], 0 }
   0x2   :  { %14 = vsyncpa [#allocation10], 0 }
   0x3   :  { %15 = vsyncpa [#allocation13], 0  ;;  %s32_s26 = sshll.u32 %s961_s1, 4  ;;  %s33_s26 = int_to_ptr.hbm [resolvable:$true] %s32_s26 }
   0x4   :  { %16 = vsyncpa [#allocation5], 0  ;;  %s878_s27 = smov [#allocation6]   ;;  %s56_s8 = sshll.u32 %s963_s3, 4  ;;  %s57_s8 = int_to_ptr.hbm [resolvable:$true] %s56_s8 }
   0x5   :  { %s34_s28 = sshll.u32 %s878_s27, 4  ;;  %s879_s9 = smov 64   ;;  %s35_s28 = int_to_ptr.vmem [resolvable:$true] %s34_s28 }
   0x6   :  { %s880_s10 = smov 4   ;;  %s881_s11 = smov [#allocation9]  }
   0x7   :  { %40 = dma.hbm_to_vmem [thread:$0]  %s33_s26, 1024, %s35_s28, [#allocation7], %s879_s9, %s879_s9, %s880_s10  }
   0x8   :  { %s58_s12 = sshll.u32 %s881_s11, 4  ;;  %s22_s15 = sshll.u32 %s960_s0, 4  ;;  %s59_s12 = int_to_ptr.vmem [resolvable:$true] %s58_s12  ;;  %s23_s15 = int_to_ptr.hbm [resolvable:$true] %s22_s15 }
   0x9   :  { %64 = dma.hbm_to_vmem [thread:$0]  %s57_s8, 1024, %s59_s12, [#allocation10], %s879_s9, %s879_s9, %s880_s10  }
   0xa   :  { %s46_s17 = sshll.u32 %s962_s2, 4  ;;  %s882_s18 = smov [#allocation3]   ;;  %s47_s17 = int_to_ptr.hbm [resolvable:$true] %s46_s17 }
   0xb   :  { %s24_s19 = sshll.u32 %s882_s18, 4  ;;  %s883_s3 = smov [#allocation8]   ;;  %s25_s19 = int_to_ptr.vmem [resolvable:$true] %s24_s19 }
   0xc   :  { %27 = dma.hbm_to_vmem [thread:$0]  %s23_s15, 64, %s25_s19, [#allocation4]  }
   0xd   :  { %s48_s20 = sshll.u32 %s883_s3, 4  ;;  %s70_s23 = sshll.u32 %s964_s4, 4  ;;  %s49_s20 = int_to_ptr.vmem [resolvable:$true] %s48_s20  ;;  %s71_s23 = int_to_ptr.hbm [resolvable:$true] %s70_s23 }
   0xe   :  { %51 = dma.hbm_to_vmem [thread:$0]  %s47_s17, 64, %s49_s20, [#allocation7]  }
   0xf   :  { %s80_s25 = sshll.u32 %s965_s5, 4  ;;  %s884_s26 = smov [#allocation11]   ;;  %s81_s25 = int_to_ptr.hbm [resolvable:$true] %s80_s25 }
  0x10   :  { %s72_s2 = sshll.u32 %s884_s26, 4  ;;  %s885_s27 = smov [#allocation12]   ;;  %s73_s2 = int_to_ptr.vmem [resolvable:$true] %s72_s2 }
  0x11   :  { %75 = dma.hbm_to_vmem [thread:$0]  %s71_s23, 64, %s73_s2, [#allocation10]  }
  0x12   :  { %s82_s28 = sshll.u32 %s885_s27, 4  ;;  %s886_s29 = smov 128   ;;  %s83_s28 = int_to_ptr.vmem [resolvable:$true] %s82_s28 }
  0x13   :  { %s887_s30 = smov 8  }
  0x14   :  { %88 = dma.hbm_to_vmem [thread:$0]  %s81_s25, 2048, %s83_s28, [#allocation13], %s886_s29, %s886_s29, %s887_s30  }
  0x15   :  { %868 = dma.done.wait [#allocation4], 64  }
  0x16   :  { %869 = vsyncadd [#allocation4], 4294967232 }
  0x17   :  { %870 = dma.done.wait [#allocation7], 1088  }
  0x18   :  { %871 = vsyncadd [#allocation7], 4294966208 }
  0x19   :  { %872 = dma.done.wait [#allocation10], 1088  }
  0x1a   :  { %873 = vsyncadd [#allocation10], 4294966208 }
  0x1b   :  { %874 = dma.done.wait [#allocation13], 2048  }
  0x1c   :  { %875 = vsyncadd [#allocation13], 4294965248  ;;  %v654_v0 = vld [vmem:[#allocation6 + $0x38] sm:$0xff]  ;;  %v653_v1 = vld [vmem:[#allocation6 + $0x30] sm:$0xff]  ;;  %s888_s8 = smov [#allocation14]   ;;  %s506_s12 = sshll.u32 %s967_s7, 4  ;;  %s507_s12 = int_to_ptr.hbm [resolvable:$true] %s506_s12 }
  0x1d   :  { %186 = vmatpush.bf16.msra.mxu0 %v654_v0  ;;  %v652_v2 = vld [vmem:[#allocation6 + $0x28] sm:$0xff]  ;;  %v651_v3 = vld [vmem:[#allocation6 + $0x20] sm:$0xff]  ;;  %v650_v4 = vld [vmem:[#allocation6 + $0x18] sm:$0xff]  ;;  %s504_s9 = sshll.u32 %s888_s8, 4  ;;  %s505_s9 = int_to_ptr.vmem [resolvable:$true] %s504_s9 }
  0x1e   :  { %v649_v5 = vld [vmem:[#allocation6 + $0x10] sm:$0xff]  ;;  %v648_v6 = vld [vmem:[#allocation6 + $0x8] sm:$0xff]  ;;  %v647_v7 = vld [vmem:[#allocation6] sm:$0xff] }
  0x1f   :  { %v121_v8 = vld [vmem:[#allocation3] sm:$0xf]  ;;  %v661_v10 = vld [vmem:[#allocation9 + $0x30] sm:$0xff]  ;;  %v690_v11 = vld [vmem:[#allocation8] ss:$0 sm:$0xff] }
  0x20   :  { %v662_v9 = vld [vmem:[#allocation9 + $0x38] sm:$0xff]  ;;  %v660_v12 = vld [vmem:[#allocation9 + $0x28] sm:$0xff]  ;;  %v659_v14 = vld [vmem:[#allocation9 + $0x20] sm:$0xff] }
  0x21   :  { %187 = vmatpush.bf16.msra.mxu0 %v653_v1  ;;  %315 = vmatpush.bf16.msra.mxu1 %v662_v9  ;;  %v658_v18 = vld [vmem:[#allocation9 + $0x18] sm:$0xff]  ;;  %v657_v23 = vld [vmem:[#allocation9 + $0x10] sm:$0xff]  ;;  %v656_v29 = vld [vmem:[#allocation9 + $0x8] sm:$0xff] }
  0x22   :  { %v655_v34 = vld [vmem:[#allocation9] sm:$0xff]  ;;  %v691_v47 = vld [vmem:[#allocation8 + $0x1] ss:$0 sm:$0xff]  ;;  %v692_v50 = vld [vmem:[#allocation8 + $0x2] ss:$0 sm:$0xff] }
  0x23   :  { %v641_v56 = vld [vmem:[#allocation12 + $0x70] sm:$0xf]  ;;  %v678_v57 = vld [vmem:[#allocation12 + $0x74] sm:$0xf0]  ;;  %v677_v58 = vld [vmem:[#allocation12 + $0x74] sm:$0xf] }
  0x24   :  { %v642_v59 = vor.u32 %v678_v57, %v641_v56  ;;  %v643_v60 = vld [vmem:[#allocation12 + $0x78] sm:$0xf0]  ;;  %v633_v62 = vld [vmem:[#allocation12 + $0x60] sm:$0xf]  ;;  %v676_v63 = vld [vmem:[#allocation12 + $0x64] sm:$0xf0] }
  0x25   :  { %188 = vmatpush.bf16.msra.mxu0 %v652_v2  ;;  %316 = vmatpush.bf16.msra.mxu1 %v661_v10  ;;  %v646_v61 = vor.u32 %v677_v58, %v643_v60  ;;  %v675_v0 = vld [vmem:[#allocation12 + $0x64] sm:$0xf]  ;;  %v634_v1 = vor.u32 %v676_v63, %v633_v62  ;;  %v635_v2 = vld [vmem:[#allocation12 + $0x68] sm:$0xf0]  ;;  %v627_v9 = vld [vmem:[#allocation12 + $0x58] sm:$0xf0] }
  0x26   :  { %471 = vmatpush.bf16.msra.mxu2 %v642_v59 }
  0x27   :  { %484 = vmatpush.bf16.msra.mxu3 %v646_v61 }
  0x29   :  { %189 = vmatpush.bf16.msra.mxu0 %v651_v3  ;;  %317 = vmatpush.bf16.msra.mxu1 %v660_v12  ;;  %v638_v3 = vor.u32 %v675_v0, %v635_v2  ;;  %v617_v12 = vld [vmem:[#allocation12 + $0x40] sm:$0xf] }
  0x2a   :  { %472 = vmatpush.bf16.msra.mxu2 %v634_v1 }
  0x2b   :  { %485 = vmatpush.bf16.msra.mxu3 %v638_v3 }
  0x2d   :  { %190 = vmatpush.bf16.msra.mxu0 %v650_v4  ;;  %318 = vmatpush.bf16.msra.mxu1 %v659_v14  ;;  %v625_v4 = vld [vmem:[#allocation12 + $0x50] sm:$0xf]  ;;  %v671_v14 = vld [vmem:[#allocation12 + $0x44] sm:$0xf] }
  0x31   :  { %191 = vmatpush.bf16.msra.mxu0 %v649_v5  ;;  %319 = vmatpush.bf16.msra.mxu1 %v658_v18  ;;  %v674_v5 = vld [vmem:[#allocation12 + $0x54] sm:$0xf0]  ;;  %v609_v18 = vld [vmem:[#allocation12 + $0x30] sm:$0xf] }
  0x35   :  { %192 = vmatpush.bf16.msra.mxu0 %v648_v6  ;;  %320 = vmatpush.bf16.msra.mxu1 %v657_v23  ;;  %v673_v6 = vld [vmem:[#allocation12 + $0x54] sm:$0xf] }
  0x36   :  { %v630_v10 = vor.u32 %v673_v6, %v627_v9  ;;  %v694_v6 = vld [vmem:[#allocation11 + $0x1] ss:$0 sm:$0xff]  ;;  %v695_v9 = vld [vmem:[#allocation11 + $0x2] ss:$0 sm:$0xff] }
  0x38   :  { %486 = vmatpush.bf16.msra.mxu3 %v630_v10 }
  0x39   :  { %193 = vmatpush.bf16.msra.mxu0 %v647_v7  ;;  %321 = vmatpush.bf16.msra.mxu1 %v656_v29  ;;  %v693_v7 = vld [vmem:[#allocation11] ss:$0 sm:$0xff] }
  0x3c   :  { %194 = vmatmul.bf16.vlgmr.msra.gmra.mxu0 %v121_v8  ;;  %v626_v8 = vor.u32 %v674_v5, %v625_v4 }
  0x3d   :  { %322 = vmatpush.bf16.msra.mxu1 %v655_v34 }
  0x3e   :  { %473 = vmatpush.bf16.msra.mxu2 %v626_v8 }
  0xb9   :  { %v195_v13 = vpop.f32.mrf.mxu0 }
  0xba   :  { %v207_v15 = vadd.f32 %v690_v11, %v195_v13  ;;  %v672_v13 = vld [vmem:[#allocation12 + $0x44] sm:$0xf0] }
  0xbc   :  { %v210_v16 = vrot.slane %v207_v15, 4  ;;  %v217_v17 = vmul.f32 %v207_v15, %v207_v15 }
  0xbe   :  { %v211_v19 = vadd.f32 %v210_v16, %v207_v15  ;;  %v218_v20 = vrot.slane %v217_v17, 4  ;;  %v618_v16 = vor.u32 %v672_v13, %v617_v12 }
  0xc0   :  { %v212_v21 = vrot.slane %v211_v19, 2  ;;  %v219_v22 = vadd.f32 %v218_v20, %v217_v17  ;;  %v619_v17 = vld [vmem:[#allocation12 + $0x48] sm:$0xf0]  ;;  %474 = vmatpush.bf16.msra.mxu2 %v618_v16  ;;  %v385_v16 = vld [vmem:[%s966_s6] sm:$0x3] }
  0xc1   :  { %v197_v24 = vpop.f32.mrf.mxu0  ;;  %v622_v20 = vor.u32 %v671_v14, %v619_v17  ;;  %v387_v17 = vperm.slane %v385_v16, 0 }
  0xc2   :  { %v213_v25 = vadd.f32 %v212_v21, %v211_v19  ;;  %v220_v26 = vrot.slane %v219_v22, 2  ;;  %v670_v19 = vld [vmem:[#allocation12 + $0x34] sm:$0xf0]  ;;  %v669_v21 = vld [vmem:[#allocation12 + $0x34] sm:$0xf] }
  0xc3   :  { %487 = vmatpush.bf16.msra.mxu3 %v622_v20 }
  0xc4   :  { %v214_v27 = vrot.slane %v213_v25, 1  ;;  %v221_v28 = vadd.f32 %v220_v26, %v219_v22  ;;  %v611_v22 = vld [vmem:[#allocation12 + $0x38] sm:$0xf0] }
  0xc5   :  { %v614_v26 = vor.u32 %v669_v21, %v611_v22 }
  0xc6   :  { %v215_v30 = vadd.f32 %v214_v27, %v213_v25  ;;  %v222_v31 = vrot.slane %v221_v28, 1  ;;  %v610_v25 = vor.u32 %v670_v19, %v609_v18  ;;  %v601_v27 = vld [vmem:[#allocation12 + $0x20] sm:$0xf]  ;;  %v388_v18 = vperm.slane %v385_v16, 1 }
  0xc7   :  { %488 = vmatpush.bf16.msra.mxu3 %v614_v26 }
  0xc8   :  { %v216_v32 = vmul.f32 0.125, %v215_v30  ;;  %v223_v33 = vadd.f32 %v222_v31, %v221_v28  ;;  %v668_v28 = vld [vmem:[#allocation12 + $0x24] sm:$0xf0]  ;;  %v667_v31 = vld [vmem:[#allocation12 + $0x24] sm:$0xf]  ;;  %475 = vmatpush.bf16.msra.mxu2 %v610_v25 }
  0xca   :  { %v224_v35 = vmul.f32 0.125, %v223_v33  ;;  %v225_v36 = vmul.f32 %v216_v32, %v216_v32  ;;  %v239_v46 = vsub.f32 %v207_v15, %v216_v32  ;;  %v603_v32 = vld [vmem:[#allocation12 + $0x28] sm:$0xf0] }
  0xcc   :  { %v226_v37 = vsub.f32 %v224_v35, %v225_v36  ;;  %v602_v35 = vor.u32 %v668_v28, %v601_v27 }
  0xce   :  { %v227_v38 = vmax.f32 %v226_v37, 0.0  ;;  %v606_v37 = vor.u32 %v667_v31, %v603_v32  ;;  %476 = vmatpush.bf16.msra.mxu2 %v602_v35 }
  0xd0   :  { %v228_v39 = vadd.f32 1e-05, %v227_v38  ;;  %v593_v38 = vld [vmem:[#allocation12 + $0x10] sm:$0xf]  ;;  %489 = vmatpush.bf16.msra.mxu3 %v606_v37 }
  0xd2   :  { %696 = vrsqrt.f32 %v228_v39  ;;  %vm235_vm1 = vweird.f32 %v228_v39 }
  0xd8   :  { %v697_v40 = vpop.eup %696 }
  0xd9   :  { %v230_v41 = vmul.f32 %v697_v40, %v228_v39  ;;  %vm236_vm0 = vweird.f32 %v697_v40  ;;  %v666_v39 = vld [vmem:[#allocation12 + $0x14] sm:$0xf0] }
  0xda   :  { %vm237_vm2 = vmor %vm235_vm1, %vm236_vm0 }
  0xdb   :  { %v231_v42 = vmul.f32 %v697_v40, %v230_v41 }
  0xdd   :  { %v232_v43 = vmul.f32 0.5, %v231_v42  ;;  %v665_v42 = vld [vmem:[#allocation12 + $0x14] sm:$0xf] }
  0xdf   :  { %v233_v44 = vsub.f32 1.5, %v232_v43  ;;  %v595_v43 = vld [vmem:[#allocation12 + $0x18] sm:$0xf0] }
  0xe1   :  { %v234_v45 = vmul.f32 %v697_v40, %v233_v44 }
  0xe3   :  { %v238_v48 = vsel %vm237_vm2, %v697_v40, %v234_v45 }
  0xe4   :  { %v240_v49 = vmul.f32 %v239_v46, %v238_v48  ;;  %v594_v46 = vor.u32 %v666_v39, %v593_v38  ;;  %v585_v48 = vld [vmem:[#allocation12] sm:$0xf] }
  0xe6   :  { %v242_v51 = vmul.f32 %v691_v47, %v240_v49  ;;  %v598_v47 = vor.u32 %v665_v42, %v595_v43  ;;  %v664_v49 = vld [vmem:[#allocation12 + $0x4] sm:$0xf0]  ;;  %477 = vmatpush.bf16.msra.mxu2 %v594_v46 }
  0xe7   :  { %v586_v56 = vor.u32 %v664_v49, %v585_v48 }
  0xe8   :  { %v244_v52 = vadd.f32 %v692_v50, %v242_v51  ;;  %490 = vmatpush.bf16.msra.mxu3 %v598_v47 }
  0xea   :  { %vm245_vm3 = vcmp.gt.f32.partialorder %v244_v52, 0.0  ;;  %v246_v53 = vmul.f32 0.2, %v244_v52  ;;  %478 = vmatpush.bf16.msra.mxu2 %v586_v56 }
  0xec   :  { %v247_v54 = vsel %vm245_vm3, %v244_v52, %v246_v53  ;;  %v663_v52 = vld [vmem:[#allocation12 + $0x4] sm:$0xf]  ;;  %v587_v53 = vld [vmem:[#allocation12 + $0x8] sm:$0xf0] }
  0xed   :  { %v264_v55 = vpack.c.bf16 %v247_v54, %v247_v54  ;;  %v590_v57 = vor.u32 %v663_v52, %v587_v53 }
  0xef   :  { %323 = vmatmul.bf16.vlgmr.msra.gmra.mxu1 %v264_v55  ;;  %491 = vmatpush.bf16.msra.mxu3 %v590_v57 }
 0x16c   :  { %v324_v11 = vpop.f32.mrf.mxu1 }
 0x16d   :  { %v947_v15 = vadd.f32 %v693_v7, %v324_v11 }
 0x16f   :  { %v330_v23 = vrot.slane %v947_v15, 4  ;;  %v337_v24 = vmul.f32 %v947_v15, %v947_v15 }
 0x171   :  { %v331_v29 = vadd.f32 %v330_v23, %v947_v15  ;;  %v338_v30 = vrot.slane %v337_v24, 4 }
 0x173   :  { %v332_v33 = vrot.slane %v331_v29, 2  ;;  %v339_v34 = vadd.f32 %v338_v30, %v337_v24 }
 0x174   :  { %v326_v36 = vpop.f32.mrf.mxu1 }
 0x175   :  { %v333_v40 = vadd.f32 %v332_v33, %v331_v29  ;;  %v340_v41 = vrot.slane %v339_v34, 2 }
 0x177   :  { %v334_v44 = vrot.slane %v333_v40, 1  ;;  %v341_v45 = vadd.f32 %v340_v41, %v339_v34 }
 0x179   :  { %v335_v50 = vadd.f32 %v334_v44, %v333_v40  ;;  %v342_v51 = vrot.slane %v341_v45, 1 }
 0x17b   :  { %v336_v54 = vmul.f32 0.125, %v335_v50  ;;  %v343_v55 = vadd.f32 %v342_v51, %v341_v45 }
 0x17d   :  { %v344_v58 = vmul.f32 0.125, %v343_v55  ;;  %v345_v59 = vmul.f32 %v336_v54, %v336_v54  ;;  %v359_v5 = vsub.f32 %v947_v15, %v336_v54 }
 0x17f   :  { %v346_v60 = vsub.f32 %v344_v58, %v345_v59 }
 0x181   :  { %v347_v61 = vmax.f32 %v346_v60, 0.0 }
 0x183   :  { %v348_v62 = vadd.f32 1e-05, %v347_v61 }
 0x185   :  { %698 = vrsqrt.f32 %v348_v62  ;;  %vm355_vm5 = vweird.f32 %v348_v62 }
 0x18b   :  { %v699_v63 = vpop.eup %698 }
 0x18c   :  { %v350_v0 = vmul.f32 %v699_v63, %v348_v62  ;;  %vm356_vm4 = vweird.f32 %v699_v63 }
 0x18d   :  { %vm357_vm6 = vmor %vm355_vm5, %vm356_vm4 }
 0x18e   :  { %v351_v1 = vmul.f32 %v699_v63, %v350_v0 }
 0x190   :  { %v352_v2 = vmul.f32 0.5, %v351_v1 }
 0x192   :  { %v353_v3 = vsub.f32 1.5, %v352_v2 }
 0x194   :  { %v354_v4 = vmul.f32 %v699_v63, %v353_v3 }
 0x196   :  { %v358_v7 = vsel %vm357_vm6, %v699_v63, %v354_v4 }
 0x197   :  { %v360_v8 = vmul.f32 %v359_v5, %v358_v7 }
 0x199   :  { %v362_v10 = vmul.f32 %v694_v6, %v360_v8 }
 0x19b   :  { %v364_v11 = vadd.f32 %v695_v9, %v362_v10 }
 0x19d   :  { %vm365_vm7 = vcmp.gt.f32.partialorder %v364_v11, 0.0  ;;  %v366_v12 = vmul.f32 0.2, %v364_v11 }
 0x19f   :  { %v367_v13 = vsel %vm365_vm7, %v364_v11, %v366_v12 }
 0x1a0   :  { %v384_v14 = vpack.c.bf16 %v367_v13, %v367_v13 }
 0x1a2   :  { %479 = vmatmul.bf16.vlgmr.msra.gmra.mxu2 %v384_v14  ;;  %492 = vmatmul.bf16.vlgmr.msra.gmra.mxu3 %v384_v14 }
 0x225   :  { %v480_v15 = vpop.f32.mrf.mxu2  ;;  %v493_v19 = vpop.f32.mrf.mxu3 }
 0x226   :  { %v481_v20 = vadd.f32 %v480_v15, %v387_v17  ;;  %v494_v21 = vadd.f32 %v493_v19, %v388_v18 }
 0x228   :  { %497 = vst [vmem:[#allocation14] sm:$0xff] %v481_v20 }
 0x229   :  { %498 = vst [vmem:[#allocation14 + $0x8] sm:$0xff] %v494_v21 }
 0x22a   :  { %509 = dma.vmem_to_hbm [thread:$0]  %s505_s9, 256, %s507_s12, [#allocation5]  }
 0x22d   :  { %v482_v22 = vpop.f32.mrf.mxu2  ;;  %v495_v23 = vpop.f32.mrf.mxu3 }
 0x22e   :  { %876 = dma.done.wait [#allocation5], 256  }
 0x22f   :  { %877 = vsyncadd [#allocation5], 4294967040 }
 0x230   :  { %514 = vsyncpa [#allocation4], 1 }
 0x231   :  { %515 = vsyncpa [#allocation7], 1 }
 0x232   :  { %516 = vsyncpa [#allocation10], 1 }
 0x233   :  { %517 = vsyncpa [#allocation13], 1 }
 0x234   :  { %518 = vsyncpa [#allocation5], 1 }

// kernel: tpu_custom_call.1
= control target key start
LH: loop header
LB: loop body
LE: loop exit
PB: predicated region body
PF: predicated region fallthrough
CT: control target
= control target key end

     0   :  { %12 = vsyncpa [#allocation4], 0  ;;  %s960_s0 = inlined_call_operand.hbm [shape: bf16[8,128], index: 0, kind: input, shape index: {}]   ;;  %s961_s1 = inlined_call_operand.hbm [shape: bf16[128,128], index: 1, kind: input, shape index: {}]   ;;  %s962_s2 = inlined_call_operand.hbm [shape: f32[3,128], index: 2, kind: input, shape index: {}]   ;;  %s963_s3 = inlined_call_operand.hbm [shape: bf16[128,128], index: 3, kind: input, shape index: {}]   ;;  %s964_s4 = inlined_call_operand.hbm [shape: f32[3,128], index: 4, kind: input, shape index: {}]   ;;  %s965_s5 = inlined_call_operand.hbm [shape: bf16[128,256], index: 5, kind: input, shape index: {}]   ;;  %s966_s6 = inlined_call_operand.vmem [shape: f32[1,256], index: 6, kind: input, shape index: {}]   ;;  %s967_s7 = inlined_call_operand.hbm [shape: f32[8,256], index: 7, kind: output, shape index: {}]  }
   0x1   :  { %13 = vsyncpa [#allocation7], 0 }
   0x2   :  { %14 = vsyncpa [#allocation10], 0 }
   0x3   :  { %15 = vsyncpa [#allocation13], 0  ;;  %s32_s26 = sshll.u32 %s961_s1, 4  ;;  %s33_s26 = int_to_ptr.hbm [resolvable:$true] %s32_s26 }
   0x4   :  { %16 = vsyncpa [#allocation5], 0  ;;  %s878_s27 = smov [#allocation6]   ;;  %s56_s8 = sshll.u32 %s963_s3, 4  ;;  %s57_s8 = int_to_ptr.hbm [resolvable:$true] %s56_s8 }
   0x5   :  { %s34_s28 = sshll.u32 %s878_s27, 4  ;;  %s879_s9 = smov 64   ;;  %s35_s28 = int_to_ptr.vmem [resolvable:$true] %s34_s28 }
   0x6   :  { %s880_s10 = smov 4   ;;  %s881_s11 = smov [#allocation9]  }
   0x7   :  { %40 = dma.hbm_to_vmem [thread:$0]  %s33_s26, 1024, %s35_s28, [#allocation7], %s879_s9, %s879_s9, %s880_s10  }
   0x8   :  { %s58_s12 = sshll.u32 %s881_s11, 4  ;;  %s22_s15 = sshll.u32 %s960_s0, 4  ;;  %s59_s12 = int_to_ptr.vmem [resolvable:$true] %s58_s12  ;;  %s23_s15 = int_to_ptr.hbm [resolvable:$true] %s22_s15 }
   0x9   :  { %64 = dma.hbm_to_vmem [thread:$0]  %s57_s8, 1024, %s59_s12, [#allocation10], %s879_s9, %s879_s9, %s880_s10  }
   0xa   :  { %s46_s17 = sshll.u32 %s962_s2, 4  ;;  %s882_s18 = smov [#allocation3]   ;;  %s47_s17 = int_to_ptr.hbm [resolvable:$true] %s46_s17 }
   0xb   :  { %s24_s19 = sshll.u32 %s882_s18, 4  ;;  %s883_s3 = smov [#allocation8]   ;;  %s25_s19 = int_to_ptr.vmem [resolvable:$true] %s24_s19 }
   0xc   :  { %27 = dma.hbm_to_vmem [thread:$0]  %s23_s15, 64, %s25_s19, [#allocation4]  }
   0xd   :  { %s48_s20 = sshll.u32 %s883_s3, 4  ;;  %s70_s23 = sshll.u32 %s964_s4, 4  ;;  %s49_s20 = int_to_ptr.vmem [resolvable:$true] %s48_s20  ;;  %s71_s23 = int_to_ptr.hbm [resolvable:$true] %s70_s23 }
   0xe   :  { %51 = dma.hbm_to_vmem [thread:$0]  %s47_s17, 64, %s49_s20, [#allocation7]  }
   0xf   :  { %s80_s25 = sshll.u32 %s965_s5, 4  ;;  %s884_s26 = smov [#allocation11]   ;;  %s81_s25 = int_to_ptr.hbm [resolvable:$true] %s80_s25 }
  0x10   :  { %s72_s2 = sshll.u32 %s884_s26, 4  ;;  %s885_s27 = smov [#allocation12]   ;;  %s73_s2 = int_to_ptr.vmem [resolvable:$true] %s72_s2 }
  0x11   :  { %75 = dma.hbm_to_vmem [thread:$0]  %s71_s23, 64, %s73_s2, [#allocation10]  }
  0x12   :  { %s82_s28 = sshll.u32 %s885_s27, 4  ;;  %s886_s29 = smov 128   ;;  %s83_s28 = int_to_ptr.vmem [resolvable:$true] %s82_s28 }
  0x13   :  { %s887_s30 = smov 8  }
  0x14   :  { %88 = dma.hbm_to_vmem [thread:$0]  %s81_s25, 2048, %s83_s28, [#allocation13], %s886_s29, %s886_s29, %s887_s30  }
  0x15   :  { %868 = dma.done.wait [#allocation4], 64  }
  0x16   :  { %869 = vsyncadd [#allocation4], 4294967232 }
  0x17   :  { %870 = dma.done.wait [#allocation7], 1088  }
  0x18   :  { %871 = vsyncadd [#allocation7], 4294966208 }
  0x19   :  { %872 = dma.done.wait [#allocation10], 1088  }
  0x1a   :  { %873 = vsyncadd [#allocation10], 4294966208 }
  0x1b   :  { %874 = dma.done.wait [#allocation13], 2048  }
  0x1c   :  { %875 = vsyncadd [#allocation13], 4294965248  ;;  %v654_v0 = vld [vmem:[#allocation6 + $0x38] sm:$0xff]  ;;  %v653_v1 = vld [vmem:[#allocation6 + $0x30] sm:$0xff]  ;;  %s888_s8 = smov [#allocation14]   ;;  %s506_s12 = sshll.u32 %s967_s7, 4  ;;  %s507_s12 = int_to_ptr.hbm [resolvable:$true] %s506_s12 }
  0x1d   :  { %186 = vmatpush.bf16.msra.mxu0 %v654_v0  ;;  %v652_v2 = vld [vmem:[#allocation6 + $0x28] sm:$0xff]  ;;  %v651_v3 = vld [vmem:[#allocation6 + $0x20] sm:$0xff]  ;;  %v650_v4 = vld [vmem:[#allocation6 + $0x18] sm:$0xff]  ;;  %s504_s9 = sshll.u32 %s888_s8, 4  ;;  %s505_s9 = int_to_ptr.vmem [resolvable:$true] %s504_s9 }
  0x1e   :  { %v649_v5 = vld [vmem:[#allocation6 + $0x10] sm:$0xff]  ;;  %v648_v6 = vld [vmem:[#allocation6 + $0x8] sm:$0xff]  ;;  %v647_v7 = vld [vmem:[#allocation6] sm:$0xff] }
  0x1f   :  { %v121_v8 = vld [vmem:[#allocation3] sm:$0xf]  ;;  %v661_v10 = vld [vmem:[#allocation9 + $0x30] sm:$0xff]  ;;  %v690_v11 = vld [vmem:[#allocation8] ss:$0 sm:$0xff] }
  0x20   :  { %v662_v9 = vld [vmem:[#allocation9 + $0x38] sm:$0xff]  ;;  %v660_v12 = vld [vmem:[#allocation9 + $0x28] sm:$0xff]  ;;  %v659_v14 = vld [vmem:[#allocation9 + $0x20] sm:$0xff] }
  0x21   :  { %187 = vmatpush.bf16.msra.mxu0 %v653_v1  ;;  %315 = vmatpush.bf16.msra.mxu1 %v662_v9  ;;  %v658_v18 = vld [vmem:[#allocation9 + $0x18] sm:$0xff]  ;;  %v657_v23 = vld [vmem:[#allocation9 + $0x10] sm:$0xff]  ;;  %v656_v29 = vld [vmem:[#allocation9 + $0x8] sm:$0xff] }
  0x22   :  { %v655_v34 = vld [vmem:[#allocation9] sm:$0xff]  ;;  %v691_v47 = vld [vmem:[#allocation8 + $0x1] ss:$0 sm:$0xff]  ;;  %v692_v50 = vld [vmem:[#allocation8 + $0x2] ss:$0 sm:$0xff] }
  0x23   :  { %v641_v56 = vld [vmem:[#allocation12 + $0x70] sm:$0xf]  ;;  %v678_v57 = vld [vmem:[#allocation12 + $0x74] sm:$0xf0]  ;;  %v677_v58 = vld [vmem:[#allocation12 + $0x74] sm:$0xf] }
  0x24   :  { %v642_v59 = vor.u32 %v678_v57, %v641_v56  ;;  %v643_v60 = vld [vmem:[#allocation12 + $0x78] sm:$0xf0]  ;;  %v633_v62 = vld [vmem:[#allocation12 + $0x60] sm:$0xf]  ;;  %v676_v63 = vld [vmem:[#allocation12 + $0x64] sm:$0xf0] }
  0x25   :  { %188 = vmatpush.bf16.msra.mxu0 %v652_v2  ;;  %316 = vmatpush.bf16.msra.mxu1 %v661_v10  ;;  %v646_v61 = vor.u32 %v677_v58, %v643_v60  ;;  %v675_v0 = vld [vmem:[#allocation12 + $0x64] sm:$0xf]  ;;  %v634_v1 = vor.u32 %v676_v63, %v633_v62  ;;  %v635_v2 = vld [vmem:[#allocation12 + $0x68] sm:$0xf0]  ;;  %v627_v9 = vld [vmem:[#allocation12 + $0x58] sm:$0xf0] }
  0x26   :  { %471 = vmatpush.bf16.msra.mxu2 %v642_v59 }
  0x27   :  { %484 = vmatpush.bf16.msra.mxu3 %v646_v61 }
  0x29   :  { %189 = vmatpush.bf16.msra.mxu0 %v651_v3  ;;  %317 = vmatpush.bf16.msra.mxu1 %v660_v12  ;;  %v638_v3 = vor.u32 %v675_v0, %v635_v2  ;;  %v617_v12 = vld [vmem:[#allocation12 + $0x40] sm:$0xf] }
  0x2a   :  { %472 = vmatpush.bf16.msra.mxu2 %v634_v1 }
  0x2b   :  { %485 = vmatpush.bf16.msra.mxu3 %v638_v3 }
  0x2d   :  { %190 = vmatpush.bf16.msra.mxu0 %v650_v4  ;;  %318 = vmatpush.bf16.msra.mxu1 %v659_v14  ;;  %v625_v4 = vld [vmem:[#allocation12 + $0x50] sm:$0xf]  ;;  %v671_v14 = vld [vmem:[#allocation12 + $0x44] sm:$0xf] }
  0x31   :  { %191 = vmatpush.bf16.msra.mxu0 %v649_v5  ;;  %319 = vmatpush.bf16.msra.mxu1 %v658_v18  ;;  %v674_v5 = vld [vmem:[#allocation12 + $0x54] sm:$0xf0]  ;;  %v609_v18 = vld [vmem:[#allocation12 + $0x30] sm:$0xf] }
  0x35   :  { %192 = vmatpush.bf16.msra.mxu0 %v648_v6  ;;  %320 = vmatpush.bf16.msra.mxu1 %v657_v23  ;;  %v673_v6 = vld [vmem:[#allocation12 + $0x54] sm:$0xf] }
  0x36   :  { %v630_v10 = vor.u32 %v673_v6, %v627_v9  ;;  %v694_v6 = vld [vmem:[#allocation11 + $0x1] ss:$0 sm:$0xff]  ;;  %v695_v9 = vld [vmem:[#allocation11 + $0x2] ss:$0 sm:$0xff] }
  0x38   :  { %486 = vmatpush.bf16.msra.mxu3 %v630_v10 }
  0x39   :  { %193 = vmatpush.bf16.msra.mxu0 %v647_v7  ;;  %321 = vmatpush.bf16.msra.mxu1 %v656_v29  ;;  %v693_v7 = vld [vmem:[#allocation11] ss:$0 sm:$0xff] }
  0x3c   :  { %194 = vmatmul.bf16.vlgmr.msra.gmra.mxu0 %v121_v8  ;;  %v626_v8 = vor.u32 %v674_v5, %v625_v4 }
  0x3d   :  { %322 = vmatpush.bf16.msra.mxu1 %v655_v34 }
  0x3e   :  { %473 = vmatpush.bf16.msra.mxu2 %v626_v8 }
  0xb9   :  { %v195_v13 = vpop.f32.mrf.mxu0 }
  0xba   :  { %v207_v15 = vadd.f32 %v690_v11, %v195_v13  ;;  %v672_v13 = vld [vmem:[#allocation12 + $0x44] sm:$0xf0] }
  0xbc   :  { %v210_v16 = vrot.slane %v207_v15, 4  ;;  %v217_v17 = vmul.f32 %v207_v15, %v207_v15 }
  0xbe   :  { %v211_v19 = vadd.f32 %v210_v16, %v207_v15  ;;  %v218_v20 = vrot.slane %v217_v17, 4  ;;  %v618_v16 = vor.u32 %v672_v13, %v617_v12 }
  0xc0   :  { %v212_v21 = vrot.slane %v211_v19, 2  ;;  %v219_v22 = vadd.f32 %v218_v20, %v217_v17  ;;  %v619_v17 = vld [vmem:[#allocation12 + $0x48] sm:$0xf0]  ;;  %474 = vmatpush.bf16.msra.mxu2 %v618_v16  ;;  %v385_v16 = vld [vmem:[%s966_s6] sm:$0x3] }
  0xc1   :  { %v197_v24 = vpop.f32.mrf.mxu0  ;;  %v622_v20 = vor.u32 %v671_v14, %v619_v17  ;;  %v387_v17 = vperm.slane %v385_v16, 0 }
  0xc2   :  { %v213_v25 = vadd.f32 %v212_v21, %v211_v19  ;;  %v220_v26 = vrot.slane %v219_v22, 2  ;;  %v670_v19 = vld [vmem:[#allocation12 + $0x34] sm:$0xf0]  ;;  %v669_v21 = vld [vmem:[#allocation12 + $0x34] sm:$0xf] }
  0xc3   :  { %487 = vmatpush.bf16.msra.mxu3 %v622_v20 }
  0xc4   :  { %v214_v27 = vrot.slane %v213_v25, 1  ;;  %v221_v28 = vadd.f32 %v220_v26, %v219_v22  ;;  %v611_v22 = vld [vmem:[#allocation12 + $0x38] sm:$0xf0] }
  0xc5   :  { %v614_v26 = vor.u32 %v669_v21, %v611_v22 }
  0xc6   :  { %v215_v30 = vadd.f32 %v214_v27, %v213_v25  ;;  %v222_v31 = vrot.slane %v221_v28, 1  ;;  %v610_v25 = vor.u32 %v670_v19, %v609_v18  ;;  %v601_v27 = vld [vmem:[#allocation12 + $0x20] sm:$0xf]  ;;  %v388_v18 = vperm.slane %v385_v16, 1 }
  0xc7   :  { %488 = vmatpush.bf16.msra.mxu3 %v614_v26 }
  0xc8   :  { %v216_v32 = vmul.f32 0.125, %v215_v30  ;;  %v223_v33 = vadd.f32 %v222_v31, %v221_v28  ;;  %v668_v28 = vld [vmem:[#allocation12 + $0x24] sm:$0xf0]  ;;  %v667_v31 = vld [vmem:[#allocation12 + $0x24] sm:$0xf]  ;;  %475 = vmatpush.bf16.msra.mxu2 %v610_v25 }
  0xca   :  { %v224_v35 = vmul.f32 0.125, %v223_v33  ;;  %v225_v36 = vmul.f32 %v216_v32, %v216_v32  ;;  %v239_v46 = vsub.f32 %v207_v15, %v216_v32  ;;  %v603_v32 = vld [vmem:[#allocation12 + $0x28] sm:$0xf0] }
  0xcc   :  { %v226_v37 = vsub.f32 %v224_v35, %v225_v36  ;;  %v602_v35 = vor.u32 %v668_v28, %v601_v27 }
  0xce   :  { %v227_v38 = vmax.f32 %v226_v37, 0.0  ;;  %v606_v37 = vor.u32 %v667_v31, %v603_v32  ;;  %476 = vmatpush.bf16.msra.mxu2 %v602_v35 }
  0xd0   :  { %v228_v39 = vadd.f32 1e-05, %v227_v38  ;;  %v593_v38 = vld [vmem:[#allocation12 + $0x10] sm:$0xf]  ;;  %489 = vmatpush.bf16.msra.mxu3 %v606_v37 }
  0xd2   :  { %696 = vrsqrt.f32 %v228_v39  ;;  %vm235_vm1 = vweird.f32 %v228_v39 }
  0xd8   :  { %v697_v40 = vpop.eup %696 }
  0xd9   :  { %v230_v41 = vmul.f32 %v697_v40, %v228_v39  ;;  %vm236_vm0 = vweird.f32 %v697_v40  ;;  %v666_v39 = vld [vmem:[#allocation12 + $0x14] sm:$0xf0] }
  0xda   :  { %vm237_vm2 = vmor %vm235_vm1, %vm236_vm0 }
  0xdb   :  { %v231_v42 = vmul.f32 %v697_v40, %v230_v41 }
  0xdd   :  { %v232_v43 = vmul.f32 0.5, %v231_v42  ;;  %v665_v42 = vld [vmem:[#allocation12 + $0x14] sm:$0xf] }
  0xdf   :  { %v233_v44 = vsub.f32 1.5, %v232_v43  ;;  %v595_v43 = vld [vmem:[#allocation12 + $0x18] sm:$0xf0] }
  0xe1   :  { %v234_v45 = vmul.f32 %v697_v40, %v233_v44 }
  0xe3   :  { %v238_v48 = vsel %vm237_vm2, %v697_v40, %v234_v45 }
  0xe4   :  { %v240_v49 = vmul.f32 %v239_v46, %v238_v48  ;;  %v594_v46 = vor.u32 %v666_v39, %v593_v38  ;;  %v585_v48 = vld [vmem:[#allocation12] sm:$0xf] }
  0xe6   :  { %v242_v51 = vmul.f32 %v691_v47, %v240_v49  ;;  %v598_v47 = vor.u32 %v665_v42, %v595_v43  ;;  %v664_v49 = vld [vmem:[#allocation12 + $0x4] sm:$0xf0]  ;;  %477 = vmatpush.bf16.msra.mxu2 %v594_v46 }
  0xe7   :  { %v586_v56 = vor.u32 %v664_v49, %v585_v48 }
  0xe8   :  { %v244_v52 = vadd.f32 %v692_v50, %v242_v51  ;;  %490 = vmatpush.bf16.msra.mxu3 %v598_v47 }
  0xea   :  { %vm245_vm3 = vcmp.gt.f32.partialorder %v244_v52, 0.0  ;;  %v246_v53 = vmul.f32 0.2, %v244_v52  ;;  %478 = vmatpush.bf16.msra.mxu2 %v586_v56 }
  0xec   :  { %v247_v54 = vsel %vm245_vm3, %v244_v52, %v246_v53  ;;  %v663_v52 = vld [vmem:[#allocation12 + $0x4] sm:$0xf]  ;;  %v587_v53 = vld [vmem:[#allocation12 + $0x8] sm:$0xf0] }
  0xed   :  { %v264_v55 = vpack.c.bf16 %v247_v54, %v247_v54  ;;  %v590_v57 = vor.u32 %v663_v52, %v587_v53 }
  0xef   :  { %323 = vmatmul.bf16.vlgmr.msra.gmra.mxu1 %v264_v55  ;;  %491 = vmatpush.bf16.msra.mxu3 %v590_v57 }
 0x16c   :  { %v324_v11 = vpop.f32.mrf.mxu1 }
 0x16d   :  { %v947_v15 = vadd.f32 %v693_v7, %v324_v11 }
 0x16f   :  { %v330_v23 = vrot.slane %v947_v15, 4  ;;  %v337_v24 = vmul.f32 %v947_v15, %v947_v15 }
 0x171   :  { %v331_v29 = vadd.f32 %v330_v23, %v947_v15  ;;  %v338_v30 = vrot.slane %v337_v24, 4 }
 0x173   :  { %v332_v33 = vrot.slane %v331_v29, 2  ;;  %v339_v34 = vadd.f32 %v338_v30, %v337_v24 }
 0x174   :  { %v326_v36 = vpop.f32.mrf.mxu1 }
 0x175   :  { %v333_v40 = vadd.f32 %v332_v33, %v331_v29  ;;  %v340_v41 = vrot.slane %v339_v34, 2 }
 0x177   :  { %v334_v44 = vrot.slane %v333_v40, 1  ;;  %v341_v45 = vadd.f32 %v340_v41, %v339_v34 }
 0x179   :  { %v335_v50 = vadd.f32 %v334_v44, %v333_v40  ;;  %v342_v51 = vrot.slane %v341_v45, 1 }
 0x17b   :  { %v336_v54 = vmul.f32 0.125, %v335_v50  ;;  %v343_v55 = vadd.f32 %v342_v51, %v341_v45 }
 0x17d   :  { %v344_v58 = vmul.f32 0.125, %v343_v55  ;;  %v345_v59 = vmul.f32 %v336_v54, %v336_v54  ;;  %v359_v5 = vsub.f32 %v947_v15, %v336_v54 }
 0x17f   :  { %v346_v60 = vsub.f32 %v344_v58, %v345_v59 }
 0x181   :  { %v347_v61 = vmax.f32 %v346_v60, 0.0 }
 0x183   :  { %v348_v62 = vadd.f32 1e-05, %v347_v61 }
 0x185   :  { %698 = vrsqrt.f32 %v348_v62  ;;  %vm355_vm5 = vweird.f32 %v348_v62 }
 0x18b   :  { %v699_v63 = vpop.eup %698 }
 0x18c   :  { %v350_v0 = vmul.f32 %v699_v63, %v348_v62  ;;  %vm356_vm4 = vweird.f32 %v699_v63 }
 0x18d   :  { %vm357_vm6 = vmor %vm355_vm5, %vm356_vm4 }
 0x18e   :  { %v351_v1 = vmul.f32 %v699_v63, %v350_v0 }
 0x190   :  { %v352_v2 = vmul.f32 0.5, %v351_v1 }
 0x192   :  { %v353_v3 = vsub.f32 1.5, %v352_v2 }
 0x194   :  { %v354_v4 = vmul.f32 %v699_v63, %v353_v3 }
 0x196   :  { %v358_v7 = vsel %vm357_vm6, %v699_v63, %v354_v4 }
 0x197   :  { %v360_v8 = vmul.f32 %v359_v5, %v358_v7 }
 0x199   :  { %v362_v10 = vmul.f32 %v694_v6, %v360_v8 }
 0x19b   :  { %v364_v11 = vadd.f32 %v695_v9, %v362_v10 }
 0x19d   :  { %vm365_vm7 = vcmp.gt.f32.partialorder %v364_v11, 0.0  ;;  %v366_v12 = vmul.f32 0.2, %v364_v11 }
 0x19f   :  { %v367_v13 = vsel %vm365_vm7, %v364_v11, %v366_v12 }
 0x1a0   :  { %v384_v14 = vpack.c.bf16 %v367_v13, %v367_v13 }
 0x1a2   :  { %479 = vmatmul.bf16.vlgmr.msra.gmra.mxu2 %v384_v14  ;;  %492 = vmatmul.bf16.vlgmr.msra.gmra.mxu3 %v384_v14 }
 0x225   :  { %v480_v15 = vpop.f32.mrf.mxu2  ;;  %v493_v19 = vpop.f32.mrf.mxu3 }
 0x226   :  { %v481_v20 = vadd.f32 %v480_v15, %v387_v17  ;;  %v494_v21 = vadd.f32 %v493_v19, %v388_v18 }
 0x228   :  { %497 = vst [vmem:[#allocation14] sm:$0xff] %v481_v20 }
 0x229   :  { %498 = vst [vmem:[#allocation14 + $0x8] sm:$0xff] %v494_v21 }
 0x22a   :  { %509 = dma.vmem_to_hbm [thread:$0]  %s505_s9, 256, %s507_s12, [#allocation5]  }
 0x22d   :  { %v482_v22 = vpop.f32.mrf.mxu2  ;;  %v495_v23 = vpop.f32.mrf.mxu3 }
 0x22e   :  { %876 = dma.done.wait [#allocation5], 256  }
 0x22f   :  { %877 = vsyncadd [#allocation5], 4294967040 }
 0x230   :  { %514 = vsyncpa [#allocation4], 1 }
 0x231   :  { %515 = vsyncpa [#allocation7], 1 }
 0x232   :  { %516 = vsyncpa [#allocation10], 1 }
 0x233   :  { %517 = vsyncpa [#allocation13], 1 }
 0x234   :  { %518 = vsyncpa [#allocation5], 1 }

</bundles_post_ra>
